<compile_context>
chip_gen: v7x
topology: tpu7x:2x2x1
jax: 0.10.0
libtpu: 0.0.40
codegen_flags: <defaults>
</compile_context>

<pallas_src>
import jax
import jax.numpy as jnp
from jax.experimental import pallas as pl
from jax.experimental.pallas import tpu as pltpu

EPS = 1e-5
LANE = 128


def _round_up(x, m):
    return -(-x // m) * m


# ----------------------------------------------------------------------------
# Fused kernel: backbone stand-in -> Projector -> final BatchNorm1d(affine=False)
# Single invocation; every ref is a whole VMEM-resident array.
# ----------------------------------------------------------------------------
def _barlow_twins_kernel(x_ref, wbk_ref,
                         w1_ref, g1_ref, b1_ref,
                         w2_ref, g2_ref, b2_ref,
                         w3_ref, d_ref):
    n2 = x_ref.shape[0]          # 2N rows: view-1 batch stacked over view-2 batch
    nb = n2 // 2

    def batchnorm(h, gamma=None, beta=None):
        # Per-view training-mode BatchNorm1d (eps=1e-5, biased variance).
        # Stats are true f32 sublane reductions on the VPU/XLU (no tiny MXU matmuls,
        # no default-precision bf16 rounding); two-pass variance is numerically stable.
        h3 = h.reshape(2, nb, h.shape[-1])                       # (view, N, F)
        mu = jnp.mean(h3, axis=1, keepdims=True)                 # (2, 1, F) f32
        var = jnp.mean(jnp.square(h3 - mu), axis=1, keepdims=True)
        y = ((h3 - mu) * jax.lax.rsqrt(var + EPS)).reshape(h.shape)   # EUP rsqrt
        if gamma is not None:
            y = y * gamma + beta
        return y

    # ---- backbone stand-in (global-average-pool already folded into wbk) ----------
    feat = jnp.dot(x_ref[...], wbk_ref[...],
                   preferred_element_type=jnp.float32)           # (2N, Fp)
    feat = jnp.maximum(feat, 0.0)

    # ---- Projector: (Linear -> BN -> ReLU) x2 -> Linear ---------------------------
    h1 = jnp.dot(feat.astype(jnp.bfloat16), w1_ref[...],
                 preferred_element_type=jnp.float32)             # (2N, Hp)
    h1 = jnp.maximum(batchnorm(h1, g1_ref[...], b1_ref[...]), 0.0)
    h2 = jnp.dot(h1.astype(jnp.bfloat16), w2_ref[...],
                 preferred_element_type=jnp.float32)             # (2N, Hp)
    h2 = jnp.maximum(batchnorm(h2, g2_ref[...], b2_ref[...]), 0.0)
    z3 = jnp.dot(h2.astype(jnp.bfloat16), w3_ref[...],
                 preferred_element_type=jnp.float32)             # (2N, Pp)

    # ---- Final self.bn = BatchNorm1d(projection_dim, affine=False) ----------------
    d_ref[...] = batchnorm(z3)


# ----------------------------------------------------------------------------
# Wrapper
# ----------------------------------------------------------------------------
def _pad2d(a, shape, fill=0.0):
    pads = [(0, t - s) for s, t in zip(a.shape, shape)]
    return jnp.pad(a.astype(jnp.float32), pads, constant_values=fill)


def barlow_twins_forward(x_pair, backbone_w, proj_params):
    x1, x2 = x_pair
    n, c, h, w = x1.shape
    hw = h * w
    chw = c * hw

    # Both views in one (2N)-row pass; cast to bf16 on the host (first matmul consumes
    # bf16 anyway, so no precision loss, half the HBM->VMEM DMA bytes).
    x = jnp.concatenate([x1.reshape(n, chw), x2.reshape(n, chw)],
                        axis=0).astype(jnp.bfloat16)                      # (2N, C*HW)

    f = backbone_w.shape[1]
    hd = proj_params["w1"].shape[1]
    p = proj_params["w3"].shape[1]
    fp = _round_up(f, LANE)
    hp = _round_up(hd, LANE)
    pp = _round_up(p, LANE)

    # Fold global-average-pool into the backbone weight on the host; zero-pad all
    # feature dims to lane multiples so VPU/EUP work in the kernel is lane-dense.
    pool = jnp.repeat(jnp.eye(c, dtype=jnp.float32), hw, axis=0) / hw     # (C*HW, C)
    wbk = _pad2d(pool @ backbone_w.astype(jnp.float32), (chw, fp)).astype(jnp.bfloat16)
    w1 = _pad2d(proj_params["w1"], (fp, hp)).astype(jnp.bfloat16)
    w2 = _pad2d(proj_params["w2"], (hp, hp)).astype(jnp.bfloat16)
    w3 = _pad2d(proj_params["w3"], (hp, pp)).astype(jnp.bfloat16)
    g1 = _pad2d(proj_params["g1"], (1, hp), fill=1.0)
    b1 = _pad2d(proj_params["b1"], (1, hp))
    g2 = _pad2d(proj_params["g2"], (1, hp), fill=1.0)
    b2 = _pad2d(proj_params["b2"], (1, hp))

    inputs = (x, wbk, w1, g1, b1, w2, g2, b2, w3)
    in_bytes = sum(int(a.size) * a.dtype.itemsize for a in inputs)
    out_bytes = 2 * n * pp * 4

    # Generation-aware VMEM budget (64 MiB on v7x, 128 MiB on v5e/v6e).
    try:
        vmem_cap = int(pltpu.get_tpu_info().vmem_capacity_bytes)
    except Exception:
        vmem_cap = 64 << 20
    vmem_limit = int(min(max(2 * (in_bytes + out_bytes) + (4 << 20), 16 << 20),
                         vmem_cap - (8 << 20)))

    # Advisory cost estimate (both views, 4 MXU matmuls; rsqrt per BN feature per view).
    flops = 2 * (2 * n) * (chw * fp + fp * hp + hp * hp + hp * pp)
    transcendentals = 2 * (2 * hp + pp)
    cost = pl.CostEstimate(flops=int(flops), transcendentals=int(transcendentals),
                           bytes_accessed=int(in_bytes + out_bytes))

    vmem_spec = pl.BlockSpec(memory_space=pltpu.MemorySpace.VMEM)
    out = pl.pallas_call(
        _barlow_twins_kernel,
        out_shape=jax.ShapeDtypeStruct((2 * n, pp), jnp.float32),
        in_specs=[vmem_spec] * len(inputs),
        out_specs=vmem_spec,
        compiler_params=pltpu.CompilerParams(vmem_limit_bytes=vmem_limit),
        cost_estimate=cost,
    )(*inputs)

    return out[:n, :p], out[n:, :p]


# ----------------------------------------------------------------------------
# Pure-JAX reference (for tolerance check) and parameter construction
# ----------------------------------------------------------------------------
def _reference_forward(x_pair, backbone_w, proj_params):
    def bn(hh, g=None, b=None):
        mu = hh.mean(0, keepdims=True)
        var = jnp.square(hh - mu).mean(0, keepdims=True)
        y = (hh - mu) / jnp.sqrt(var + EPS)
        return y * g + b if g is not None else y

    def encode(xi):
        feat = jnp.maximum(jnp.mean(xi, axis=(2, 3)) @ backbone_w, 0.0)
        h1 = jnp.maximum(bn(feat @ proj_params["w1"], proj_params["g1"], proj_params["b1"]), 0.0)
        h2 = jnp.maximum(bn(h1 @ proj_params["w2"], proj_params["g2"], proj_params["b2"]), 0.0)
        return bn(h2 @ proj_params["w3"])

    x1, x2 = x_pair
    return encode(x1), encode(x2)


def make_params(key, in_ch, feature_size, hidden_dim, projection_dim):
    ks = jax.random.split(key, 4)

    def lin(k, fan_in, fan_out):
        bound = 1.0 / jnp.sqrt(fan_in)
        return jax.random.uniform(k, (fan_in, fan_out), jnp.float32, -bound, bound)

    backbone_w = lin(ks[0], in_ch, feature_size)
    proj = {
        "w1": lin(ks[1], feature_size, hidden_dim),
        "g1": jnp.ones((1, hidden_dim), jnp.float32),
        "b1": jnp.zeros((1, hidden_dim), jnp.float32),
        "w2": lin(ks[2], hidden_dim, hidden_dim),
        "g2": jnp.ones((1, hidden_dim), jnp.float32),
        "b2": jnp.zeros((1, hidden_dim), jnp.float32),
        "w3": lin(ks[3], hidden_dim, projection_dim),
    }
    return backbone_w, proj


if __name__ == "__main__":
    # Small shapes consistent with the module.
    N, C, H, W = 8, 4, 16, 16
    FEATURE_SIZE, HIDDEN_DIM, PROJECTION_DIM = 32, 64, 128

    key = jax.random.PRNGKey(0)
    k_x1, k_x2, k_p = jax.random.split(key, 3)
    x1 = jax.random.normal(k_x1, (N, C, H, W), jnp.float32)
    x2 = jax.random.normal(k_x2, (N, C, H, W), jnp.float32)

    backbone_w, proj_params = make_params(k_p, C, FEATURE_SIZE, HIDDEN_DIM, PROJECTION_DIM)

    d1, d2 = barlow_twins_forward((x1, x2), backbone_w, proj_params)
    jax.block_until_ready((d1, d2))

    assert d1.shape == (N, PROJECTION_DIM) and d2.shape == (N, PROJECTION_DIM)
    assert bool(jnp.all(jnp.isfinite(d1))) and bool(jnp.all(jnp.isfinite(d2)))

    # Loose tolerance: kernel uses bf16 MXU operands (f32 accumulation), BN output ~O(1).
    r1, r2 = _reference_forward((x1, x2), backbone_w, proj_params)
    assert float(jnp.max(jnp.abs(d1 - r1))) < 1e-1
    assert float(jnp.max(jnp.abs(d2 - r2))) < 1e-1

    print("KERNEL_OK")
</pallas_src>

<mosaic_0001>
module attributes {stable_mosaic.version = 11 : i64} {
  func.func @_barlow_twins_kernel(%arg0: memref<16x1024xbf16, #tpu.memory_space<vmem>>, %arg1: memref<1024x128xbf16, #tpu.memory_space<vmem>>, %arg2: memref<128x128xbf16, #tpu.memory_space<vmem>>, %arg3: memref<1x128xf32, #tpu.memory_space<vmem>>, %arg4: memref<1x128xf32, #tpu.memory_space<vmem>>, %arg5: memref<128x128xbf16, #tpu.memory_space<vmem>>, %arg6: memref<1x128xf32, #tpu.memory_space<vmem>>, %arg7: memref<1x128xf32, #tpu.memory_space<vmem>>, %arg8: memref<128x128xbf16, #tpu.memory_space<vmem>>, %arg9: memref<16x128xf32, #tpu.memory_space<vmem>>) attributes {dimension_semantics = [], scalar_prefetch = 0 : i64, scratch_operands = 0 : i64, tpu.core_type = #tpu.core_type<tc>} {
    %c0 = arith.constant 0 : index
    %c0_0 = arith.constant 0 : index
    %0 = vector.load %arg0[%c0, %c0_0] : memref<16x1024xbf16, #tpu.memory_space<vmem>>, vector<16x1024xbf16>
    %c0_1 = arith.constant 0 : index
    %c0_2 = arith.constant 0 : index
    %1 = vector.load %arg1[%c0_1, %c0_2] : memref<1024x128xbf16, #tpu.memory_space<vmem>>, vector<1024x128xbf16>
    %cst = arith.constant dense<0.000000e+00> : vector<16x128xf32>
    %2 = tpu.matmul %0, %1, %cst {dimension_numbers = #tpu.dot_dimension_numbers<[1], [0], [0], [1], [0, 0, 1, 1], [], []>} : vector<16x1024xbf16>, vector<1024x128xbf16>, vector<16x128xf32> -> vector<16x128xf32>
    %cst_3 = arith.constant 0.000000e+00 : f32
    %3 = vector.broadcast %cst_3 : f32 to vector<16x128xf32>
    %4 = arith.maximumf %2, %3 : vector<16x128xf32>
    %5 = arith.truncf %4 : vector<16x128xf32> to vector<16x128xbf16>
    %c0_4 = arith.constant 0 : index
    %c0_5 = arith.constant 0 : index
    %6 = vector.load %arg2[%c0_4, %c0_5] : memref<128x128xbf16, #tpu.memory_space<vmem>>, vector<128x128xbf16>
    %cst_6 = arith.constant dense<0.000000e+00> : vector<16x128xf32>
    %7 = tpu.matmul %5, %6, %cst_6 {dimension_numbers = #tpu.dot_dimension_numbers<[1], [0], [0], [1], [0, 0, 1, 1], [], []>} : vector<16x128xbf16>, vector<128x128xbf16>, vector<16x128xf32> -> vector<16x128xf32>
    %c0_7 = arith.constant 0 : index
    %c0_8 = arith.constant 0 : index
    %8 = vector.load %arg3[%c0_7, %c0_8] : memref<1x128xf32, #tpu.memory_space<vmem>>, vector<1x128xf32>
    %c0_9 = arith.constant 0 : index
    %c0_10 = arith.constant 0 : index
    %9 = vector.load %arg4[%c0_9, %c0_10] : memref<1x128xf32, #tpu.memory_space<vmem>>, vector<1x128xf32>
    %10 = vector.shape_cast %7 : vector<16x128xf32> to vector<2x8x128xf32>
    %cst_11 = arith.constant dense<0.000000e+00> : vector<2x128xf32>
    %11 = vector.multi_reduction <add>, %10, %cst_11 [1] : vector<2x8x128xf32> to vector<2x128xf32>
    %12 = vector.shape_cast %11 : vector<2x128xf32> to vector<2x1x128xf32>
    %cst_12 = arith.constant 8.000000e+00 : f32
    %13 = vector.broadcast %cst_12 : f32 to vector<2x1x128xf32>
    %14 = arith.divf %12, %13 : vector<2x1x128xf32>
    %15 = vector.broadcast %14 : vector<2x1x128xf32> to vector<2x8x128xf32>
    %16 = arith.subf %10, %15 : vector<2x8x128xf32>
    %17 = arith.mulf %16, %16 : vector<2x8x128xf32>
    %cst_13 = arith.constant dense<0.000000e+00> : vector<2x128xf32>
    %18 = vector.multi_reduction <add>, %17, %cst_13 [1] : vector<2x8x128xf32> to vector<2x128xf32>
    %19 = vector.shape_cast %18 : vector<2x128xf32> to vector<2x1x128xf32>
    %cst_14 = arith.constant 8.000000e+00 : f32
    %20 = vector.broadcast %cst_14 : f32 to vector<2x1x128xf32>
    %21 = arith.divf %19, %20 : vector<2x1x128xf32>
    %22 = vector.broadcast %14 : vector<2x1x128xf32> to vector<2x8x128xf32>
    %23 = arith.subf %10, %22 : vector<2x8x128xf32>
    %cst_15 = arith.constant 9.99999974E-6 : f32
    %24 = vector.broadcast %cst_15 : f32 to vector<2x1x128xf32>
    %25 = arith.addf %21, %24 : vector<2x1x128xf32>
    %26 = math.rsqrt %25 : vector<2x1x128xf32>
    %27 = vector.broadcast %26 : vector<2x1x128xf32> to vector<2x8x128xf32>
    %28 = arith.mulf %23, %27 : vector<2x8x128xf32>
    %29 = vector.shape_cast %28 : vector<2x8x128xf32> to vector<16x128xf32>
    %30 = vector.broadcast %8 : vector<1x128xf32> to vector<16x128xf32>
    %31 = arith.mulf %29, %30 : vector<16x128xf32>
    %32 = vector.broadcast %9 : vector<1x128xf32> to vector<16x128xf32>
    %33 = arith.addf %31, %32 : vector<16x128xf32>
    %cst_16 = arith.constant 0.000000e+00 : f32
    %34 = vector.broadcast %cst_16 : f32 to vector<16x128xf32>
    %35 = arith.maximumf %33, %34 : vector<16x128xf32>
    %36 = arith.truncf %35 : vector<16x128xf32> to vector<16x128xbf16>
    %c0_17 = arith.constant 0 : index
    %c0_18 = arith.constant 0 : index
    %37 = vector.load %arg5[%c0_17, %c0_18] : memref<128x128xbf16, #tpu.memory_space<vmem>>, vector<128x128xbf16>
    %cst_19 = arith.constant dense<0.000000e+00> : vector<16x128xf32>
    %38 = tpu.matmul %36, %37, %cst_19 {dimension_numbers = #tpu.dot_dimension_numbers<[1], [0], [0], [1], [0, 0, 1, 1], [], []>} : vector<16x128xbf16>, vector<128x128xbf16>, vector<16x128xf32> -> vector<16x128xf32>
    %c0_20 = arith.constant 0 : index
    %c0_21 = arith.constant 0 : index
    %39 = vector.load %arg6[%c0_20, %c0_21] : memref<1x128xf32, #tpu.memory_space<vmem>>, vector<1x128xf32>
    %c0_22 = arith.constant 0 : index
    %c0_23 = arith.constant 0 : index
    %40 = vector.load %arg7[%c0_22, %c0_23] : memref<1x128xf32, #tpu.memory_space<vmem>>, vector<1x128xf32>
    %41 = vector.shape_cast %38 : vector<16x128xf32> to vector<2x8x128xf32>
    %cst_24 = arith.constant dense<0.000000e+00> : vector<2x128xf32>
    %42 = vector.multi_reduction <add>, %41, %cst_24 [1] : vector<2x8x128xf32> to vector<2x128xf32>
    %43 = vector.shape_cast %42 : vector<2x128xf32> to vector<2x1x128xf32>
    %cst_25 = arith.constant 8.000000e+00 : f32
    %44 = vector.broadcast %cst_25 : f32 to vector<2x1x128xf32>
    %45 = arith.divf %43, %44 : vector<2x1x128xf32>
    %46 = vector.broadcast %45 : vector<2x1x128xf32> to vector<2x8x128xf32>
    %47 = arith.subf %41, %46 : vector<2x8x128xf32>
    %48 = arith.mulf %47, %47 : vector<2x8x128xf32>
    %cst_26 = arith.constant dense<0.000000e+00> : vector<2x128xf32>
    %49 = vector.multi_reduction <add>, %48, %cst_26 [1] : vector<2x8x128xf32> to vector<2x128xf32>
    %50 = vector.shape_cast %49 : vector<2x128xf32> to vector<2x1x128xf32>
    %cst_27 = arith.constant 8.000000e+00 : f32
    %51 = vector.broadcast %cst_27 : f32 to vector<2x1x128xf32>
    %52 = arith.divf %50, %51 : vector<2x1x128xf32>
    %53 = vector.broadcast %45 : vector<2x1x128xf32> to vector<2x8x128xf32>
    %54 = arith.subf %41, %53 : vector<2x8x128xf32>
    %cst_28 = arith.constant 9.99999974E-6 : f32
    %55 = vector.broadcast %cst_28 : f32 to vector<2x1x128xf32>
    %56 = arith.addf %52, %55 : vector<2x1x128xf32>
    %57 = math.rsqrt %56 : vector<2x1x128xf32>
    %58 = vector.broadcast %57 : vector<2x1x128xf32> to vector<2x8x128xf32>
    %59 = arith.mulf %54, %58 : vector<2x8x128xf32>
    %60 = vector.shape_cast %59 : vector<2x8x128xf32> to vector<16x128xf32>
    %61 = vector.broadcast %39 : vector<1x128xf32> to vector<16x128xf32>
    %62 = arith.mulf %60, %61 : vector<16x128xf32>
    %63 = vector.broadcast %40 : vector<1x128xf32> to vector<16x128xf32>
    %64 = arith.addf %62, %63 : vector<16x128xf32>
    %cst_29 = arith.constant 0.000000e+00 : f32
    %65 = vector.broadcast %cst_29 : f32 to vector<16x128xf32>
    %66 = arith.maximumf %64, %65 : vector<16x128xf32>
    %67 = arith.truncf %66 : vector<16x128xf32> to vector<16x128xbf16>
    %c0_30 = arith.constant 0 : index
    %c0_31 = arith.constant 0 : index
    %68 = vector.load %arg8[%c0_30, %c0_31] : memref<128x128xbf16, #tpu.memory_space<vmem>>, vector<128x128xbf16>
    %cst_32 = arith.constant dense<0.000000e+00> : vector<16x128xf32>
    %69 = tpu.matmul %67, %68, %cst_32 {dimension_numbers = #tpu.dot_dimension_numbers<[1], [0], [0], [1], [0, 0, 1, 1], [], []>} : vector<16x128xbf16>, vector<128x128xbf16>, vector<16x128xf32> -> vector<16x128xf32>
    %70 = vector.shape_cast %69 : vector<16x128xf32> to vector<2x8x128xf32>
    %cst_33 = arith.constant dense<0.000000e+00> : vector<2x128xf32>
    %71 = vector.multi_reduction <add>, %70, %cst_33 [1] : vector<2x8x128xf32> to vector<2x128xf32>
    %72 = vector.shape_cast %71 : vector<2x128xf32> to vector<2x1x128xf32>
    %cst_34 = arith.constant 8.000000e+00 : f32
    %73 = vector.broadcast %cst_34 : f32 to vector<2x1x128xf32>
    %74 = arith.divf %72, %73 : vector<2x1x128xf32>
    %75 = vector.broadcast %74 : vector<2x1x128xf32> to vector<2x8x128xf32>
    %76 = arith.subf %70, %75 : vector<2x8x128xf32>
    %77 = arith.mulf %76, %76 : vector<2x8x128xf32>
    %cst_35 = arith.constant dense<0.000000e+00> : vector<2x128xf32>
    %78 = vector.multi_reduction <add>, %77, %cst_35 [1] : vector<2x8x128xf32> to vector<2x128xf32>
    %79 = vector.shape_cast %78 : vector<2x128xf32> to vector<2x1x128xf32>
    %cst_36 = arith.constant 8.000000e+00 : f32
    %80 = vector.broadcast %cst_36 : f32 to vector<2x1x128xf32>
    %81 = arith.divf %79, %80 : vector<2x1x128xf32>
    %82 = vector.broadcast %74 : vector<2x1x128xf32> to vector<2x8x128xf32>
    %83 = arith.subf %70, %82 : vector<2x8x128xf32>
    %cst_37 = arith.constant 9.99999974E-6 : f32
    %84 = vector.broadcast %cst_37 : f32 to vector<2x1x128xf32>
    %85 = arith.addf %81, %84 : vector<2x1x128xf32>
    %86 = math.rsqrt %85 : vector<2x1x128xf32>
    %87 = vector.broadcast %86 : vector<2x1x128xf32> to vector<2x8x128xf32>
    %88 = arith.mulf %83, %87 : vector<2x8x128xf32>
    %89 = vector.shape_cast %88 : vector<2x8x128xf32> to vector<16x128xf32>
    %c0_38 = arith.constant 0 : index
    %c0_39 = arith.constant 0 : index
    %90 = vector.load %arg9[%c0_38, %c0_39] : memref<16x128xf32, #tpu.memory_space<vmem>>, vector<16x128xf32>
    tpu.vector_store %arg9[%c0_38, %c0_39], %89 {strides = array<i32>} : memref<16x128xf32, #tpu.memory_space<vmem>>, vector<16x128xf32>,
    return
  }
}

</mosaic_0001>

<bundles_post_ra>
// kernel: tpu_custom_call.1
= control target key start
LH: loop header
LB: loop body
LE: loop exit
PB: predicated region body
PF: predicated region fallthrough
CT: control target
= control target key end

     0   :  { %14 = vsyncpa [#allocation3], 0  ;;  %s2041_s0 = inlined_call_operand.hbm [shape: bf16[16,1024], index: 0, kind: input, shape index: {}]   ;;  %s2042_s1 = inlined_call_operand.hbm [shape: bf16[1024,128], index: 1, kind: input, shape index: {}]   ;;  %s2043_s2 = inlined_call_operand.hbm [shape: bf16[128,128], index: 2, kind: input, shape index: {}]   ;;  %s2044_s3 = inlined_call_operand.vmem [shape: f32[1,128], index: 3, kind: input, shape index: {}]   ;;  %s2045_s4 = inlined_call_operand.vmem [shape: f32[1,128], index: 4, kind: input, shape index: {}]   ;;  %s2046_s5 = inlined_call_operand.hbm [shape: bf16[128,128], index: 5, kind: input, shape index: {}]   ;;  %s2047_s6 = inlined_call_operand.vmem [shape: f32[1,128], index: 6, kind: input, shape index: {}]   ;;  %s2048_s7 = inlined_call_operand.vmem [shape: f32[1,128], index: 7, kind: input, shape index: {}]   ;;  %s2049_s8 = inlined_call_operand.hbm [shape: bf16[128,128], index: 8, kind: input, shape index: {}]   ;;  %s2050_s9 = inlined_call_operand.hbm [shape: f32[16,128], index: 9, kind: output, shape index: {}]  }
   0x1   :  { %15 = vsyncpa [#allocation6], 0 }
   0x2   :  { %16 = vsyncpa [#allocation9], 0 }
   0x3   :  { %17 = vsyncpa [#allocation4], 0  ;;  %s1851_s30 = smov [#allocation5]   ;;  %s1711_s13 = scalar_lea.hbm %s2042_s1, 8192 }
   0x4   :  { %s35_s10 = sshll.u32 %s1851_s30, 4  ;;  %p1712_p0 = scmp.ne.s32.totalorder %s2042_s1, %s1711_s13  ;;  %s36_s10 = int_to_ptr.vmem [resolvable:$true] %s35_s10 }
   0x5   :  { %p1715_p1 = scmp.lt.u32.totalorder %s1711_s13, %s2042_s1 }
   0x7   :  { %p1717_p2 = pnand %p1715_p1, %p1712_p0 }
   0x9   :  { %1720 = shalt.err (!%p1717_p2)
}
   0xa   :  { %s1721_s18 = scalar_lea.vmem %s36_s10, 8192  ;;  %p1726_p4 = scmp.lt.s32.totalorder %s36_s10, %s36_s10 }
   0xb   :  { %p1722_p3 = scmp.ne.s32.totalorder %s36_s10, %s1721_s18  ;;  %p1727_p5 = scmp.lt.s32.totalorder %s1721_s18, %s1721_s18 }
   0xd   :  { %p1728_p6 = por %p1727_p5, %p1726_p4 }
   0xf   :  { %p1729_p7 = pnand %p1728_p6, %p1722_p3 }
  0x11   :  { %1732 = shalt.err (!%p1729_p7)
}
  0x12   :  { %s1852_s19 = smov 64   ;;  %s1853_s20 = smov 4  }
  0x13   :  { %41 = dma.hbm_to_vmem [thread:$0]  %s2042_s1, 8192, %s36_s10, [#allocation6], %s1852_s19, %s1852_s19, %s1853_s20  }
  0x14   :  { %s1854_s23 = smov [#allocation8]   ;;  %s1855_s25 = smov [#allocation2]  }
  0x15   :  { %s63_s24 = sshll.u32 %s1854_s23, 4  ;;  %s23_s26 = sshll.u32 %s1855_s25, 4  ;;  %s64_s24 = int_to_ptr.vmem [resolvable:$true] %s63_s24  ;;  %s24_s26 = int_to_ptr.vmem [resolvable:$true] %s23_s26 }
  0x16   :  { %s1733_s29 = scalar_lea.hbm %s2046_s5, 1024 }
  0x17   :  { %p1734_p8 = scmp.ne.s32.totalorder %s2046_s5, %s1733_s29  ;;  %p1737_p9 = scmp.lt.u32.totalorder %s1733_s29, %s2046_s5 }
  0x19   :  { %p1739_p10 = pnand %p1737_p9, %p1734_p8 }
  0x1b   :  { %1742 = shalt.err (!%p1739_p10)
}
  0x1c   :  { %s1743_s1 = scalar_lea.vmem %s64_s24, 1024  ;;  %p1748_p12 = scmp.lt.s32.totalorder %s64_s24, %s64_s24 }
  0x1d   :  { %p1744_p11 = scmp.ne.s32.totalorder %s64_s24, %s1743_s1  ;;  %p1749_p13 = scmp.lt.s32.totalorder %s1743_s1, %s1743_s1 }
  0x1f   :  { %p1750_p0 = por %p1749_p13, %p1748_p12 }
  0x21   :  { %p1751_p1 = pnand %p1750_p0, %p1744_p11 }
  0x23   :  { %1754 = shalt.err (!%p1751_p1)
}
  0x24   :  { %69 = dma.hbm_to_vmem [thread:$0]  %s2046_s5, 1024, %s64_s24, [#allocation9], %s1852_s19, %s1852_s19, %s1853_s20  }
  0x25   :  { %s1755_s17 = scalar_lea.hbm %s2041_s0, 1024 }
  0x26   :  { %p1756_p2 = scmp.ne.s32.totalorder %s2041_s0, %s1755_s17  ;;  %p1759_p3 = scmp.lt.u32.totalorder %s1755_s17, %s2041_s0 }
  0x28   :  { %p1761_p4 = pnand %p1759_p3, %p1756_p2 }
  0x2a   :  { %1764 = shalt.err (!%p1761_p4)
}
  0x2b   :  { %s1765_s25 = scalar_lea.vmem %s24_s26, 1024  ;;  %p1770_p6 = scmp.lt.s32.totalorder %s24_s26, %s24_s26 }
  0x2c   :  { %p1766_p5 = scmp.ne.s32.totalorder %s24_s26, %s1765_s25  ;;  %p1771_p7 = scmp.lt.s32.totalorder %s1765_s25, %s1765_s25 }
  0x2e   :  { %p1772_p8 = por %p1771_p7, %p1770_p6 }
  0x30   :  { %p1773_p9 = pnand %p1772_p8, %p1766_p5 }
  0x32   :  { %1776 = shalt.err (!%p1773_p9)
}
  0x33   :  { %s1856_s5 = smov 512   ;;  %s1857_s24 = smov 32  }
  0x34   :  { %29 = dma.hbm_to_vmem [thread:$0]  %s2041_s0, 1024, %s24_s26, [#allocation3], %s1856_s5, %s1856_s5, %s1857_s24  }
  0x35   :  { %s1858_s29 = smov [#allocation7]   ;;  %s1859_s11 = smov [#allocation10]  }
  0x36   :  { %s47_s30 = sshll.u32 %s1858_s29, 4  ;;  %s79_s12 = sshll.u32 %s1859_s11, 4  ;;  %s48_s30 = int_to_ptr.vmem [resolvable:$true] %s47_s30  ;;  %s80_s12 = int_to_ptr.vmem [resolvable:$true] %s79_s12 }
  0x37   :  { %s1777_s10 = scalar_lea.hbm %s2043_s2, 1024 }
  0x38   :  { %p1778_p10 = scmp.ne.s32.totalorder %s2043_s2, %s1777_s10  ;;  %p1781_p11 = scmp.lt.u32.totalorder %s1777_s10, %s2043_s2 }
  0x3a   :  { %p1783_p12 = pnand %p1781_p11, %p1778_p10 }
  0x3c   :  { %1786 = shalt.err (!%p1783_p12)
}
  0x3d   :  { %s1787_s0 = scalar_lea.vmem %s48_s30, 1024  ;;  %p1792_p0 = scmp.lt.s32.totalorder %s48_s30, %s48_s30 }
  0x3e   :  { %p1788_p13 = scmp.ne.s32.totalorder %s48_s30, %s1787_s0  ;;  %p1793_p1 = scmp.lt.s32.totalorder %s1787_s0, %s1787_s0 }
  0x40   :  { %p1794_p2 = por %p1793_p1, %p1792_p0 }
  0x42   :  { %p1795_p3 = pnand %p1794_p2, %p1788_p13 }
  0x44   :  { %1798 = shalt.err (!%p1795_p3)
}
  0x45   :  { %53 = dma.hbm_to_vmem [thread:$0]  %s2043_s2, 1024, %s48_s30, [#allocation6], %s1852_s19, %s1852_s19, %s1853_s20  }
  0x46   :  { %s1799_s23 = scalar_lea.hbm %s2049_s8, 1024 }
  0x47   :  { %p1800_p4 = scmp.ne.s32.totalorder %s2049_s8, %s1799_s23  ;;  %p1803_p5 = scmp.lt.u32.totalorder %s1799_s23, %s2049_s8 }
  0x49   :  { %p1805_p6 = pnand %p1803_p5, %p1800_p4 }
  0x4b   :  { %1808 = shalt.err (!%p1805_p6)
}
  0x4c   :  { %s1809_s28 = scalar_lea.vmem %s80_s12, 1024  ;;  %p1814_p8 = scmp.lt.s32.totalorder %s80_s12, %s80_s12 }
  0x4d   :  { %p1810_p7 = scmp.ne.s32.totalorder %s80_s12, %s1809_s28  ;;  %p1815_p9 = scmp.lt.s32.totalorder %s1809_s28, %s1809_s28 }
  0x4f   :  { %p1816_p10 = por %p1815_p9, %p1814_p8 }
  0x51   :  { %p1817_p11 = pnand %p1816_p10, %p1810_p7 }
  0x53   :  { %1820 = shalt.err (!%p1817_p11)
}
  0x54   :  { %85 = dma.hbm_to_vmem [thread:$0]  %s2049_s8, 1024, %s80_s12, [#allocation9], %s1852_s19, %s1852_s19, %s1853_s20  }
  0x55   :  { %1843 = dma.done.wait [#allocation3], 1024  }
  0x56   :  { %1844 = vsyncadd [#allocation3], 4294966272 }
  0x57   :  { %1845 = dma.done.wait [#allocation6], 9216  }
  0x58   :  { %1846 = vsyncadd [#allocation6], 4294958080 }
  0x59   :  { %1847 = dma.done.wait [#allocation9], 2048  }
  0x5a   :  { %1848 = vsyncadd [#allocation9], 4294965248  ;;  %v1611_v0 = vld [vmem:[#allocation5 + $0x40] sm:$0xff]   ;;  %v1615_v4 = vld [vmem:[#allocation5 + $0x48] sm:$0xff]   ;;  %vm1861_vm0 = vmmov 0  }
  0x5b   :  { %v1612_v1 = vld [vmem:[#allocation5 + $0xc0] sm:$0xff]   ;;  %1422 = vmatprep.subr.bf16.mxu0 %v1611_v0  ;;  %v1616_v5 = vld [vmem:[#allocation5 + $0xc8] sm:$0xff]   ;;  %v1619_v8 = vld [vmem:[#allocation5 + $0x50] sm:$0xff]  }
  0x5c   :  { %v1613_v2 = vld [vmem:[#allocation5] sm:$0xff]   ;;  %1444 = vmatprep.subr.bf16.mxu1 %v1612_v1  ;;  %v1617_v6 = vld [vmem:[#allocation5 + $0x8] sm:$0xff]   ;;  %v1620_v9 = vld [vmem:[#allocation5 + $0xd0] sm:$0xff]  }
  0x5d   :  { %v1614_v3 = vld [vmem:[#allocation5 + $0x80] sm:$0xff]   ;;  %1423 = vmatpush3.bf16.msra.mxu0 %v1613_v2  ;;  %v1618_v7 = vld [vmem:[#allocation5 + $0x88] sm:$0xff]   ;;  %v1621_v10 = vld [vmem:[#allocation5 + $0x10] sm:$0xff]  }
  0x5e   :  { %1445 = vmatpush3.bf16.msra.mxu1 %v1614_v3  ;;  %1424 = vmatprep.subr.bf16.mxu0 %v1615_v4  ;;  %v1622_v11 = vld [vmem:[#allocation5 + $0x90] sm:$0xff]   ;;  %v1623_v12 = vld [vmem:[#allocation5 + $0x58] sm:$0xff]   ;;  %v1627_v16 = vld [vmem:[#allocation5 + $0x60] sm:$0xff]  }
  0x5f   :  { %1446 = vmatprep.subr.bf16.mxu1 %v1616_v5  ;;  %v1624_v13 = vld [vmem:[#allocation5 + $0xd8] sm:$0xff]   ;;  %v1628_v17 = vld [vmem:[#allocation5 + $0xe0] sm:$0xff]   ;;  %v1631_v20 = vld [vmem:[#allocation5 + $0x68] sm:$0xff]  }
  0x60   :  { %v1625_v14 = vld [vmem:[#allocation5 + $0x18] sm:$0xff]   ;;  %v1629_v18 = vld [vmem:[#allocation5 + $0x20] sm:$0xff]   ;;  %v1632_v21 = vld [vmem:[#allocation5 + $0xe8] sm:$0xff]  }
  0x61   :  { %1425 = vmatpush3.bf16.msra.mxu0 %v1617_v6  ;;  %v1626_v15 = vld [vmem:[#allocation5 + $0x98] sm:$0xff]   ;;  %v1630_v19 = vld [vmem:[#allocation5 + $0xa0] sm:$0xff]   ;;  %v1633_v22 = vld [vmem:[#allocation5 + $0x28] sm:$0xff]  }
  0x62   :  { %1447 = vmatpush3.bf16.msra.mxu1 %v1618_v7  ;;  %1426 = vmatprep.subr.bf16.mxu0 %v1619_v8  ;;  %v1634_v23 = vld [vmem:[#allocation5 + $0xa8] sm:$0xff]   ;;  %v1635_v24 = vld [vmem:[#allocation5 + $0x70] sm:$0xff]   ;;  %v1639_v28 = vld [vmem:[#allocation5 + $0x78] sm:$0xff]  }
  0x63   :  { %1448 = vmatprep.subr.bf16.mxu1 %v1620_v9  ;;  %v1636_v25 = vld [vmem:[#allocation5 + $0xf0] sm:$0xff]   ;;  %v1640_v29 = vld [vmem:[#allocation5 + $0xf8] sm:$0xff]   ;;  %v102_v32 = vld [vmem:[#allocation2] sm:$0xff] }
  0x64   :  { %v1637_v26 = vld [vmem:[#allocation5 + $0x30] sm:$0xff]   ;;  %v1641_v30 = vld [vmem:[#allocation5 + $0x38] sm:$0xff]   ;;  %v106_v33 = vld [vmem:[#allocation2 + $0x20] sm:$0xff] }
  0x65   :  { %1427 = vmatpush3.bf16.msra.mxu0 %v1621_v10  ;;  %v1638_v27 = vld [vmem:[#allocation5 + $0xb0] sm:$0xff]   ;;  %v1642_v31 = vld [vmem:[#allocation5 + $0xb8] sm:$0xff]   ;;  %v103_v34 = vld [vmem:[#allocation2 + $0x8] sm:$0xff]  ;;  %v1322_v35 = vcombine.low %v102_v32, %v106_v33  ;;  %v1323_v36 = vcombine.high %v102_v32, %v106_v33 }
  0x66   :  { %1449 = vmatpush3.bf16.msra.mxu1 %v1622_v11  ;;  %1428 = vmatprep.subr.bf16.mxu0 %v1623_v12  ;;  %v107_v37 = vld [vmem:[#allocation2 + $0x28] sm:$0xff]  ;;  %v1643_v40 = vld [vmem:[#allocation5 + $0x140] sm:$0xff]   ;;  %v1651_v48 = vld [vmem:[#allocation5 + $0x150] sm:$0xff]  }
  0x67   :  { %1450 = vmatprep.subr.bf16.mxu1 %v1624_v13  ;;  %v1324_v38 = vcombine.low %v103_v34, %v107_v37  ;;  %v1325_v39 = vcombine.high %v103_v34, %v107_v37  ;;  %694 = vmatprep.mubr.bf16.mxu0 %v1323_v36  ;;  %v1644_v41 = vld [vmem:[#allocation5 + $0x1c0] sm:$0xff]   ;;  %v1647_v44 = vld [vmem:[#allocation5 + $0x148] sm:$0xff]   ;;  %v1652_v49 = vld [vmem:[#allocation5 + $0x1d0] sm:$0xff]  }
  0x68   :  { %v1645_v42 = vld [vmem:[#allocation5 + $0x100] sm:$0xff]   ;;  %v1648_v45 = vld [vmem:[#allocation5 + $0x1c8] sm:$0xff]   ;;  %v1653_v50 = vld [vmem:[#allocation5 + $0x110] sm:$0xff]  }
  0x69   :  { %1429 = vmatpush3.bf16.msra.mxu0 %v1625_v14  ;;  %735 = vmatprep.mubr.bf16.mxu1 %v1325_v39  ;;  %v1646_v43 = vld [vmem:[#allocation5 + $0x180] sm:$0xff]   ;;  %v1649_v46 = vld [vmem:[#allocation5 + $0x108] sm:$0xff]   ;;  %v1654_v51 = vld [vmem:[#allocation5 + $0x190] sm:$0xff]  }
  0x6a   :  { %1451 = vmatpush3.bf16.msra.mxu1 %v1626_v15  ;;  %1430 = vmatprep.subr.bf16.mxu0 %v1627_v16  ;;  %v1650_v47 = vld [vmem:[#allocation5 + $0x188] sm:$0xff]   ;;  %v1655_v52 = vld [vmem:[#allocation5 + $0x158] sm:$0xff]   ;;  %v1659_v56 = vld [vmem:[#allocation5 + $0x160] sm:$0xff]  }
  0x6b   :  { %1452 = vmatprep.subr.bf16.mxu1 %v1628_v17  ;;  %v1656_v53 = vld [vmem:[#allocation5 + $0x1d8] sm:$0xff]   ;;  %v1660_v57 = vld [vmem:[#allocation5 + $0x1e0] sm:$0xff]   ;;  %v1663_v60 = vld [vmem:[#allocation5 + $0x168] sm:$0xff]   ;;  %v1860_v17 = vmov 0.0  }
  0x6c   :  { %v1657_v54 = vld [vmem:[#allocation5 + $0x118] sm:$0xff]   ;;  %v1661_v58 = vld [vmem:[#allocation5 + $0x120] sm:$0xff]   ;;  %v1664_v61 = vld [vmem:[#allocation5 + $0x1e8] sm:$0xff]  }
  0x6d   :  { %1431 = vmatpush3.bf16.msra.mxu0 %v1629_v18  ;;  %v1658_v55 = vld [vmem:[#allocation5 + $0x198] sm:$0xff]   ;;  %v1662_v59 = vld [vmem:[#allocation5 + $0x1a0] sm:$0xff]   ;;  %v1665_v62 = vld [vmem:[#allocation5 + $0x128] sm:$0xff]  }
  0x6e   :  { %1453 = vmatpush3.bf16.msra.mxu1 %v1630_v19  ;;  %1432 = vmatprep.subr.bf16.mxu0 %v1631_v20  ;;  %v1666_v63 = vld [vmem:[#allocation5 + $0x1a8] sm:$0xff]   ;;  %v1667_v0 = vld [vmem:[#allocation5 + $0x170] sm:$0xff]   ;;  %v1671_v4 = vld [vmem:[#allocation5 + $0x178] sm:$0xff]  }
  0x6f   :  { %1454 = vmatprep.subr.bf16.mxu1 %v1632_v21  ;;  %v1668_v1 = vld [vmem:[#allocation5 + $0x1f0] sm:$0xff]   ;;  %v1672_v5 = vld [vmem:[#allocation5 + $0x1f8] sm:$0xff]   ;;  %v1675_v16 = vld [vmem:[#allocation7] sm:$0xff]  }
  0x70   :  { %v1669_v2 = vld [vmem:[#allocation5 + $0x130] sm:$0xff]   ;;  %v1673_v6 = vld [vmem:[#allocation5 + $0x138] sm:$0xff]   ;;  %v1676_v18 = vld [vmem:[#allocation7 + $0x8] sm:$0xff]  }
  0x71   :  { %1433 = vmatpush3.bf16.msra.mxu0 %v1633_v22  ;;  %v1670_v3 = vld [vmem:[#allocation5 + $0x1b0] sm:$0xff]   ;;  %v1674_v7 = vld [vmem:[#allocation5 + $0x1b8] sm:$0xff]   ;;  %v1679_v21 = vld [vmem:[#allocation7 + $0x20] sm:$0xff]  }
  0x72   :  { %1455 = vmatpush3.bf16.msra.mxu1 %v1634_v23  ;;  %1434 = vmatprep.subr.bf16.mxu0 %v1635_v24  ;;  %v104_v8 = vld [vmem:[#allocation2 + $0x10] sm:$0xff]  ;;  %v105_v12 = vld [vmem:[#allocation2 + $0x18] sm:$0xff]  ;;  %v1680_v22 = vld [vmem:[#allocation7 + $0x28] sm:$0xff]  }
  0x73   :  { %1456 = vmatprep.subr.bf16.mxu1 %v1636_v25  ;;  %v108_v9 = vld [vmem:[#allocation2 + $0x30] sm:$0xff]  ;;  %v109_v13 = vld [vmem:[#allocation2 + $0x38] sm:$0xff] }
  0x74   :  { %v1326_v10 = vcombine.low %v104_v8, %v108_v9  ;;  %v1327_v11 = vcombine.high %v104_v8, %v108_v9  ;;  %v1328_v14 = vcombine.low %v105_v12, %v109_v13  ;;  %v1329_v15 = vcombine.high %v105_v12, %v109_v13  ;;  %v1677_v19 = vld [vmem:[#allocation7 + $0x10] sm:$0xff]   ;;  %v1678_v20 = vld [vmem:[#allocation7 + $0x18] sm:$0xff]  }
  0x75   :  { %1435 = vmatpush3.bf16.msra.mxu0 %v1637_v26  ;;  %v1681_v23 = vld [vmem:[#allocation7 + $0x30] sm:$0xff]   ;;  %v1682_v24 = vld [vmem:[#allocation7 + $0x38] sm:$0xff]  }
  0x76   :  { %1457 = vmatpush3.bf16.msra.mxu1 %v1638_v27  ;;  %1436 = vmatprep.subr.bf16.mxu0 %v1639_v28 }
  0x77   :  { %1458 = vmatprep.subr.bf16.mxu1 %v1640_v29 }
  0x79   :  { %1437 = vmatpush3.bf16.msra.mxu0 %v1641_v30 }
  0x7a   :  { %1459 = vmatpush3.bf16.msra.mxu1 %v1642_v31  ;;  %1466 = vmatprep.subr.bf16.mxu0 %v1643_v40 }
  0x7b   :  { %1488 = vmatprep.subr.bf16.mxu1 %v1644_v41 }
  0x7c   :  { %695 = vmatmul.mubr.bf16.vlgmr.msra.gmra.mrb[0].mxu0 %v1322_v35 }
  0x7d   :  { %736 = vmatmul.mubr.bf16.vlgmr.msra.gmra.mrb[0].mxu1 %v1324_v38  ;;  %1467 = vmatpush3.bf16.msra.mxu0 %v1645_v42 }
  0x7e   :  { %1489 = vmatpush3.bf16.msra.mxu1 %v1646_v43  ;;  %1468 = vmatprep.subr.bf16.mxu0 %v1647_v44 }
  0x7f   :  { %1490 = vmatprep.subr.bf16.mxu1 %v1648_v45  ;;  %776 = vmatprep.mubr.bf16.mxu0 %v1327_v11 }
  0x80   :  { %817 = vmatprep.mubr.bf16.mxu1 %v1329_v15 }
  0x81   :  { %1469 = vmatpush3.bf16.msra.mxu0 %v1649_v46 }
  0x82   :  { %1491 = vmatpush3.bf16.msra.mxu1 %v1650_v47  ;;  %1470 = vmatprep.subr.bf16.mxu0 %v1651_v48 }
  0x83   :  { %1492 = vmatprep.subr.bf16.mxu1 %v1652_v49 }
  0x85   :  { %1471 = vmatpush3.bf16.msra.mxu0 %v1653_v50 }
  0x86   :  { %1493 = vmatpush3.bf16.msra.mxu1 %v1654_v51  ;;  %1472 = vmatprep.subr.bf16.mxu0 %v1655_v52 }
  0x87   :  { %1494 = vmatprep.subr.bf16.mxu1 %v1656_v53 }
  0x89   :  { %1473 = vmatpush3.bf16.msra.mxu0 %v1657_v54 }
  0x8a   :  { %1495 = vmatpush3.bf16.msra.mxu1 %v1658_v55  ;;  %1474 = vmatprep.subr.bf16.mxu0 %v1659_v56 }
  0x8b   :  { %1496 = vmatprep.subr.bf16.mxu1 %v1660_v57 }
  0x8d   :  { %1475 = vmatpush3.bf16.msra.mxu0 %v1661_v58  ;;  %v1683_v58 = vld [vmem:[#allocation8] sm:$0xff]  }
  0x8e   :  { %1497 = vmatpush3.bf16.msra.mxu1 %v1662_v59  ;;  %1476 = vmatprep.subr.bf16.mxu0 %v1663_v60  ;;  %v1684_v59 = vld [vmem:[#allocation8 + $0x8] sm:$0xff]   ;;  %v1685_v60 = vld [vmem:[#allocation8 + $0x10] sm:$0xff]  }
  0x8f   :  { %1498 = vmatprep.subr.bf16.mxu1 %v1664_v61  ;;  %v1686_v61 = vld [vmem:[#allocation8 + $0x18] sm:$0xff]  }
  0x91   :  { %1477 = vmatpush3.bf16.msra.mxu0 %v1665_v62  ;;  %v1687_v62 = vld [vmem:[#allocation8 + $0x20] sm:$0xff]  }
  0x92   :  { %1499 = vmatpush3.bf16.msra.mxu1 %v1666_v63  ;;  %1478 = vmatprep.subr.bf16.mxu0 %v1667_v0  ;;  %v1688_v63 = vld [vmem:[#allocation8 + $0x28] sm:$0xff]   ;;  %v1689_v0 = vld [vmem:[#allocation8 + $0x30] sm:$0xff]  }
  0x93   :  { %1500 = vmatprep.subr.bf16.mxu1 %v1668_v1  ;;  %v1690_v1 = vld [vmem:[#allocation8 + $0x38] sm:$0xff]  }
  0x95   :  { %1479 = vmatpush3.bf16.msra.mxu0 %v1669_v2 }
  0x96   :  { %1501 = vmatpush3.bf16.msra.mxu1 %v1670_v3  ;;  %1480 = vmatprep.subr.bf16.mxu0 %v1671_v4 }
  0x97   :  { %1502 = vmatprep.subr.bf16.mxu1 %v1672_v5 }
  0x99   :  { %1481 = vmatpush3.bf16.msra.mxu0 %v1673_v6 }
  0x9a   :  { %1503 = vmatpush3.bf16.msra.mxu1 %v1674_v7  ;;  %1537 = vmatprep.subr.bf16.mxu0 %v1860_v17 }
  0x9b   :  { %1557 = vmatprep.subr.bf16.mxu1 %v1860_v17 }
  0x9c   :  { %777 = vmatmul.mubr.bf16.vlgmr.msra.gmra.mrb[4].mxu0 %v1326_v10 }
  0x9d   :  { %818 = vmatmul.mubr.bf16.vlgmr.msra.gmra.mrb[4].mxu1 %v1328_v14  ;;  %1538 = vmatpush3.bf16.msra.mxu0 %v1675_v16 }
  0x9e   :  { %1539 = vmatprep.subr.bf16.mxu0 %v1860_v17  ;;  %1553 = vmatprep.mubr.msk.bf16.mxu0 %vm1861_vm0, %v1860_v17 }
  0x9f   :  { %1573 = vmatprep.mubr.msk.bf16.mxu1 %vm1861_vm0, %v1860_v17  ;;  %1558 = vmatpush3.bf16.msra.mxu1 %v1683_v58  ;;  %v1695_v58 = vld [vmem:[#allocation10 + $0x20] sm:$0xff]  }
  0xa0   :  { %1559 = vmatprep.subr.bf16.mxu1 %v1860_v17 }
  0xa1   :  { %1540 = vmatpush3.bf16.msra.mxu0 %v1676_v18 }
  0xa2   :  { %1541 = vmatprep.subr.bf16.mxu0 %v1860_v17 }
  0xa3   :  { %1560 = vmatpush3.bf16.msra.mxu1 %v1684_v59  ;;  %v1696_v59 = vld [vmem:[#allocation10 + $0x28] sm:$0xff]  }
  0xa4   :  { %1561 = vmatprep.subr.bf16.mxu1 %v1860_v17 }
  0xa5   :  { %1542 = vmatpush3.bf16.msra.mxu0 %v1677_v19 }
  0xa6   :  { %1543 = vmatprep.subr.bf16.mxu0 %v1860_v17 }
  0xa7   :  { %1562 = vmatpush3.bf16.msra.mxu1 %v1685_v60  ;;  %v1697_v60 = vld [vmem:[#allocation10 + $0x30] sm:$0xff]  }
  0xa8   :  { %1563 = vmatprep.subr.bf16.mxu1 %v1860_v17 }
  0xa9   :  { %1544 = vmatpush3.bf16.msra.mxu0 %v1678_v20 }
  0xaa   :  { %1545 = vmatprep.subr.bf16.mxu0 %v1860_v17 }
  0xab   :  { %1564 = vmatpush3.bf16.msra.mxu1 %v1686_v61  ;;  %v1698_v61 = vld [vmem:[#allocation10 + $0x38] sm:$0xff]  }
  0xac   :  { %1565 = vmatprep.subr.bf16.mxu1 %v1860_v17 }
  0xad   :  { %1546 = vmatpush3.bf16.msra.mxu0 %v1679_v21 }
  0xae   :  { %1547 = vmatprep.subr.bf16.mxu0 %v1860_v17 }
  0xaf   :  { %1566 = vmatpush3.bf16.msra.mxu1 %v1687_v62 }
  0xb0   :  { %1567 = vmatprep.subr.bf16.mxu1 %v1860_v17 }
  0xb1   :  { %1548 = vmatpush3.bf16.msra.mxu0 %v1680_v22 }
  0xb2   :  { %1549 = vmatprep.subr.bf16.mxu0 %v1860_v17 }
  0xb3   :  { %1568 = vmatpush3.bf16.msra.mxu1 %v1688_v63 }
  0xb4   :  { %1569 = vmatprep.subr.bf16.mxu1 %v1860_v17 }
  0xb5   :  { %1550 = vmatpush3.bf16.msra.mxu0 %v1681_v23 }
  0xb6   :  { %1551 = vmatprep.subr.bf16.mxu0 %v1860_v17 }
  0xb7   :  { %1570 = vmatpush3.bf16.msra.mxu1 %v1689_v0 }
  0xb8   :  { %1571 = vmatprep.subr.bf16.mxu1 %v1860_v17 }
  0xb9   :  { %1552 = vmatpush3.bf16.msra.mxu0 %v1682_v24 }
  0xba   :  { %1577 = vmatprep.subr.bf16.mxu0 %v1860_v17 }
  0xbb   :  { %1572 = vmatpush3.bf16.msra.mxu1 %v1690_v1 }
 0x14f   :  { %v1438_v25 = vpop.f32.mrb[0].mxu0 }
 0x150   :  { %v1460_v26 = vpop.f32.mrb[0].mxu1  ;;  %v1439_v27 = vpop.f32.mrb[1].mxu0 }
 0x151   :  { %v1440_v28 = vadd.f32 %v1439_v27, %v1438_v25  ;;  %v1461_v29 = vpop.f32.mrb[1].mxu1  ;;  %v1441_v30 = vpop.f32.mrb[2].mxu0 }
 0x152   :  { %v1462_v31 = vadd.f32 %v1461_v29, %v1460_v26  ;;  %v1463_v32 = vpop.f32.mrb[2].mxu1  ;;  %v1442_v33 = vpop.f32.mrb[3].mxu0 }
 0x153   :  { %v1443_v34 = vadd.f32 %v1442_v33, %v1441_v30  ;;  %v1464_v35 = vpop.f32.mrb[3].mxu1 }
 0x154   :  { %v738_v36 = vadd.f32 %v1462_v31, %v1440_v28  ;;  %v1465_v37 = vadd.f32 %v1464_v35, %v1463_v32 }
 0x156   :  { %v741_v38 = vadd.f32 %v1465_v37, %v1443_v34 }
 0x16f   :  { %v1482_v39 = vpop.f32.mrb[4].mxu0 }
 0x170   :  { %v1504_v40 = vpop.f32.mrb[4].mxu1  ;;  %v1483_v41 = vpop.f32.mrb[5].mxu0 }
 0x171   :  { %v1484_v42 = vadd.f32 %v1483_v41, %v1482_v39  ;;  %v1505_v43 = vpop.f32.mrb[5].mxu1  ;;  %v1485_v44 = vpop.f32.mrb[6].mxu0 }
 0x172   :  { %v1506_v45 = vadd.f32 %v1505_v43, %v1504_v40  ;;  %v1507_v46 = vpop.f32.mrb[6].mxu1  ;;  %v1486_v47 = vpop.f32.mrb[7].mxu0 }
 0x173   :  { %v779_v48 = vadd.f32 %v1484_v42, %v738_v36  ;;  %v1487_v49 = vadd.f32 %v1486_v47, %v1485_v44  ;;  %v1508_v50 = vpop.f32.mrb[7].mxu1  ;;  %v1402_v42 = vld [vmem:[%s2044_s3] ss:$0 sm:$0xff] }
 0x174   :  { %v1509_v51 = vadd.f32 %v1508_v50, %v1507_v46 }
 0x175   :  { %v820_v52 = vadd.f32 %v1506_v45, %v779_v48  ;;  %v782_v53 = vadd.f32 %v1487_v49, %v741_v38  ;;  %v1403_v45 = vld [vmem:[%s2045_s4] ss:$0 sm:$0xff] }
 0x177   :  { %v823_v54 = vadd.f32 %v1509_v51, %v782_v53  ;;  %v826_v55 = vmax.f32 %v820_v52, 0.0 }
 0x179   :  { %v827_v56 = vmax.f32 %v823_v54, 0.0  ;;  %v1691_v54 = vld [vmem:[#allocation10] sm:$0xff]  }
 0x17b   :  { %v828_v57 = vpack.c.bf16 %v827_v56, %v826_v55  ;;  %v1692_v55 = vld [vmem:[#allocation10 + $0x8] sm:$0xff]   ;;  %v1693_v56 = vld [vmem:[#allocation10 + $0x10] sm:$0xff]  }
 0x17d   :  { %1554 = vmatmul.mubr.bf16.vlgmr.msra.gmra.mrb[8].mxu0 %v828_v57  ;;  %v1694_v57 = vld [vmem:[#allocation10 + $0x18] sm:$0xff]  }
 0x17e   :  { %1593 = vmatprep.mubr.msk.bf16.mxu0 %vm1861_vm0, %v1860_v17  ;;  %1578 = vmatpush3.bf16.msra.mxu0 %v1691_v54 }
 0x17f   :  { %1579 = vmatprep.subr.bf16.mxu0 %v1860_v17 }
 0x182   :  { %1580 = vmatpush3.bf16.msra.mxu0 %v1692_v55 }
 0x183   :  { %1581 = vmatprep.subr.bf16.mxu0 %v1860_v17 }
 0x186   :  { %1582 = vmatpush3.bf16.msra.mxu0 %v1693_v56 }
 0x187   :  { %1583 = vmatprep.subr.bf16.mxu0 %v1860_v17 }
 0x18a   :  { %1584 = vmatpush3.bf16.msra.mxu0 %v1694_v57 }
 0x18b   :  { %1585 = vmatprep.subr.bf16.mxu0 %v1860_v17 }
 0x18e   :  { %1586 = vmatpush3.bf16.msra.mxu0 %v1695_v58 }
 0x18f   :  { %1587 = vmatprep.subr.bf16.mxu0 %v1860_v17 }
 0x192   :  { %1588 = vmatpush3.bf16.msra.mxu0 %v1696_v59 }
 0x193   :  { %1589 = vmatprep.subr.bf16.mxu0 %v1860_v17 }
 0x196   :  { %1590 = vmatpush3.bf16.msra.mxu0 %v1697_v60 }
 0x197   :  { %1591 = vmatprep.subr.bf16.mxu0 %v1860_v17 }
 0x19a   :  { %1592 = vmatpush3.bf16.msra.mxu0 %v1698_v61 }
 0x250   :  { %v927_v2 = vpop.f32.mrb[8].mxu0 }
 0x251   :  { %v936_v3 = vrot.slane %v927_v2, 4  ;;  %v1555_v4 = vpop.f32.mrb[9].mxu0 }
 0x252   :  { %v930_v5 = vpop.f32.mrb[10].mxu0 }
 0x253   :  { %v937_v6 = vadd.f32 %v936_v3, %v927_v2  ;;  %v942_v7 = vrot.slane %v930_v5, 4  ;;  %v1556_v8 = vpop.f32.mrb[11].mxu0 }
 0x255   :  { %v938_v9 = vrot.slane %v937_v6, 2  ;;  %v943_v10 = vadd.f32 %v942_v7, %v930_v5 }
 0x257   :  { %v939_v11 = vadd.f32 %v938_v9, %v937_v6  ;;  %v944_v12 = vrot.slane %v943_v10, 2 }
 0x259   :  { %v940_v13 = vrot.slane %v939_v11, 1  ;;  %v945_v14 = vadd.f32 %v944_v12, %v943_v10 }
 0x25b   :  { %v941_v15 = vadd.f32 %v940_v13, %v939_v11  ;;  %v946_v16 = vrot.slane %v945_v14, 1 }
 0x25d   :  { %v949_v18 = vmul.f32 0.125, %v941_v15  ;;  %v947_v19 = vadd.f32 %v946_v16, %v945_v14 }
 0x25f   :  { %v951_v20 = vsub.f32 %v927_v2, %v949_v18  ;;  %v950_v21 = vmul.f32 0.125, %v947_v19 }
 0x261   :  { %v953_v22 = vmul.f32 %v951_v20, %v951_v20  ;;  %v952_v23 = vsub.f32 %v930_v5, %v950_v21 }
 0x263   :  { %v955_v24 = vrot.slane %v953_v22, 4  ;;  %v954_v25 = vmul.f32 %v952_v23, %v952_v23 }
 0x265   :  { %v956_v26 = vadd.f32 %v955_v24, %v953_v22  ;;  %v961_v27 = vrot.slane %v954_v25, 4 }
 0x267   :  { %v957_v28 = vrot.slane %v956_v26, 2  ;;  %v962_v29 = vadd.f32 %v961_v27, %v954_v25 }
 0x269   :  { %v958_v30 = vadd.f32 %v957_v28, %v956_v26  ;;  %v963_v31 = vrot.slane %v962_v29, 2 }
 0x26b   :  { %v959_v32 = vrot.slane %v958_v30, 1  ;;  %v964_v33 = vadd.f32 %v963_v31, %v962_v29 }
 0x26d   :  { %v960_v34 = vadd.f32 %v959_v32, %v958_v30  ;;  %v965_v35 = vrot.slane %v964_v33, 1 }
 0x26f   :  { %v967_v36 = vmul.f32 0.125, %v960_v34  ;;  %v966_v37 = vadd.f32 %v965_v35, %v964_v33 }
 0x271   :  { %v969_v38 = vadd.f32 1e-05, %v967_v36  ;;  %v968_v39 = vmul.f32 0.125, %v966_v37  ;;  %v1412_v37 = vld [vmem:[%s2047_s6] ss:$0 sm:$0xff]  ;;  %s1862_s6 = smov [#allocation11]  }
 0x273   :  { %1699 = vrsqrt.f32 %v969_v38  ;;  %v970_v40 = vadd.f32 1e-05, %v968_v39 }
 0x275   :  { %1701 = vrsqrt.f32 %v970_v40  ;;  %v1413_v40 = vld [vmem:[%s2048_s7] ss:$0 sm:$0xff]  ;;  %s1308_s7 = sshll.u32 %s1862_s6, 4  ;;  %s1309_s7 = int_to_ptr.vmem [resolvable:$true] %s1308_s7 }
 0x276   :  { %s1821_s13 = scalar_lea.vmem %s1309_s7, 256  ;;  %p1826_p13 = scmp.lt.s32.totalorder %s1309_s7, %s1309_s7 }
 0x277   :  { %p1822_p12 = scmp.ne.s32.totalorder %s1309_s7, %s1821_s13  ;;  %p1827_p0 = scmp.lt.s32.totalorder %s1821_s13, %s1821_s13 }
 0x279   :  { %p1828_p1 = por %p1827_p0, %p1826_p13 }
 0x27b   :  { %p1829_p2 = pnand %p1828_p1, %p1822_p12 }
 0x27d   :  { %v1700_v41 = vpop.eup %1699 }
 0x27e   :  { %v973_v43 = vmul.f32 %v1700_v41, %v951_v20 }
 0x27f   :  { %v1702_v44 = vpop.eup %1701 }
 0x280   :  { %v981_v46 = vmul.f32 %v1402_v42, %v973_v43  ;;  %v974_v47 = vmul.f32 %v1702_v44, %v952_v23 }
 0x282   :  { %v989_v48 = vadd.f32 %v1403_v45, %v981_v46  ;;  %v982_v49 = vmul.f32 %v1402_v42, %v974_v47 }
 0x284   :  { %v990_v50 = vadd.f32 %v1403_v45, %v982_v49  ;;  %v991_v51 = vmax.f32 %v989_v48, 0.0 }
 0x286   :  { %v992_v52 = vmax.f32 %v990_v50, 0.0 }
 0x288   :  { %v993_v53 = vpack.c.bf16 %v992_v52, %v991_v51 }
 0x28a   :  { %1574 = vmatmul.mubr.bf16.vlgmr.msra.gmra.mrb[8].mxu1 %v993_v53 }
 0x35d   :  { %v1092_v62 = vpop.f32.mrb[8].mxu1 }
 0x35e   :  { %v1101_v63 = vrot.slane %v1092_v62, 4  ;;  %v1575_v0 = vpop.f32.mrb[9].mxu1 }
 0x35f   :  { %v1095_v1 = vpop.f32.mrb[10].mxu1 }
 0x360   :  { %v1102_v2 = vadd.f32 %v1101_v63, %v1092_v62  ;;  %v1107_v3 = vrot.slane %v1095_v1, 4  ;;  %v1576_v4 = vpop.f32.mrb[11].mxu1 }
 0x362   :  { %v1103_v5 = vrot.slane %v1102_v2, 2  ;;  %v1108_v6 = vadd.f32 %v1107_v3, %v1095_v1 }
 0x364   :  { %v1104_v7 = vadd.f32 %v1103_v5, %v1102_v2  ;;  %v1109_v8 = vrot.slane %v1108_v6, 2 }
 0x366   :  { %v1105_v9 = vrot.slane %v1104_v7, 1  ;;  %v1110_v10 = vadd.f32 %v1109_v8, %v1108_v6 }
 0x368   :  { %v1106_v11 = vadd.f32 %v1105_v9, %v1104_v7  ;;  %v1111_v12 = vrot.slane %v1110_v10, 1 }
 0x36a   :  { %v1113_v13 = vmul.f32 0.125, %v1106_v11  ;;  %v1112_v14 = vadd.f32 %v1111_v12, %v1110_v10 }
 0x36c   :  { %v1115_v15 = vsub.f32 %v1092_v62, %v1113_v13  ;;  %v1114_v17 = vmul.f32 0.125, %v1112_v14 }
 0x36e   :  { %v1117_v16 = vmul.f32 %v1115_v15, %v1115_v15  ;;  %v1116_v18 = vsub.f32 %v1095_v1, %v1114_v17 }
 0x370   :  { %v1119_v19 = vrot.slane %v1117_v16, 4  ;;  %v1118_v20 = vmul.f32 %v1116_v18, %v1116_v18 }
 0x372   :  { %v1120_v21 = vadd.f32 %v1119_v19, %v1117_v16  ;;  %v1125_v22 = vrot.slane %v1118_v20, 4 }
 0x374   :  { %v1121_v23 = vrot.slane %v1120_v21, 2  ;;  %v1126_v24 = vadd.f32 %v1125_v22, %v1118_v20 }
 0x376   :  { %v1122_v25 = vadd.f32 %v1121_v23, %v1120_v21  ;;  %v1127_v26 = vrot.slane %v1126_v24, 2 }
 0x378   :  { %v1123_v27 = vrot.slane %v1122_v25, 1  ;;  %v1128_v28 = vadd.f32 %v1127_v26, %v1126_v24 }
 0x37a   :  { %v1124_v29 = vadd.f32 %v1123_v27, %v1122_v25  ;;  %v1129_v30 = vrot.slane %v1128_v28, 1 }
 0x37c   :  { %v1131_v31 = vmul.f32 0.125, %v1124_v29  ;;  %v1130_v32 = vadd.f32 %v1129_v30, %v1128_v28 }
 0x37e   :  { %v1133_v33 = vadd.f32 1e-05, %v1131_v31  ;;  %v1132_v34 = vmul.f32 0.125, %v1130_v32 }
 0x380   :  { %1703 = vrsqrt.f32 %v1133_v33  ;;  %v1134_v35 = vadd.f32 1e-05, %v1132_v34 }
 0x382   :  { %1705 = vrsqrt.f32 %v1134_v35 }
 0x38a   :  { %v1704_v36 = vpop.eup %1703 }
 0x38b   :  { %v1137_v38 = vmul.f32 %v1704_v36, %v1115_v15 }
 0x38c   :  { %v1706_v39 = vpop.eup %1705 }
 0x38d   :  { %v1145_v41 = vmul.f32 %v1412_v37, %v1137_v38  ;;  %v1138_v42 = vmul.f32 %v1706_v39, %v1116_v18 }
 0x38f   :  { %v1153_v43 = vadd.f32 %v1413_v40, %v1145_v41  ;;  %v1146_v44 = vmul.f32 %v1412_v37, %v1138_v42 }
 0x391   :  { %v1154_v45 = vadd.f32 %v1413_v40, %v1146_v44  ;;  %v1155_v46 = vmax.f32 %v1153_v43, 0.0 }
 0x393   :  { %v1156_v47 = vmax.f32 %v1154_v45, 0.0 }
 0x395   :  { %v1157_v48 = vpack.c.bf16 %v1156_v47, %v1155_v46 }
 0x397   :  { %1594 = vmatmul.mubr.bf16.vlgmr.msra.gmra.mrb[12].mxu0 %v1157_v48 }
 0x46a   :  { %v1256_v49 = vpop.f32.mrb[12].mxu0 }
 0x46b   :  { %v1263_v50 = vrot.slane %v1256_v49, 4  ;;  %v1595_v51 = vpop.f32.mrb[13].mxu0 }
 0x46c   :  { %v1259_v52 = vpop.f32.mrb[14].mxu0 }
 0x46d   :  { %v1264_v53 = vadd.f32 %v1263_v50, %v1256_v49  ;;  %v1269_v54 = vrot.slane %v1259_v52, 4  ;;  %v1596_v55 = vpop.f32.mrb[15].mxu0 }
 0x46f   :  { %v1265_v56 = vrot.slane %v1264_v53, 2  ;;  %v1270_v57 = vadd.f32 %v1269_v54, %v1259_v52 }
 0x471   :  { %v1266_v58 = vadd.f32 %v1265_v56, %v1264_v53  ;;  %v1271_v59 = vrot.slane %v1270_v57, 2 }
 0x473   :  { %v1267_v60 = vrot.slane %v1266_v58, 1  ;;  %v1272_v61 = vadd.f32 %v1271_v59, %v1270_v57 }
 0x475   :  { %v1268_v62 = vadd.f32 %v1267_v60, %v1266_v58  ;;  %v1273_v63 = vrot.slane %v1272_v61, 1 }
 0x477   :  { %v1275_v0 = vmul.f32 0.125, %v1268_v62  ;;  %v1274_v1 = vadd.f32 %v1273_v63, %v1272_v61 }
 0x479   :  { %v1277_v2 = vsub.f32 %v1256_v49, %v1275_v0  ;;  %v1276_v3 = vmul.f32 0.125, %v1274_v1 }
 0x47b   :  { %v1279_v4 = vmul.f32 %v1277_v2, %v1277_v2  ;;  %v1278_v5 = vsub.f32 %v1259_v52, %v1276_v3 }
 0x47d   :  { %v1281_v6 = vrot.slane %v1279_v4, 4  ;;  %v1280_v7 = vmul.f32 %v1278_v5, %v1278_v5 }
 0x47f   :  { %v1282_v8 = vadd.f32 %v1281_v6, %v1279_v4  ;;  %v1287_v9 = vrot.slane %v1280_v7, 4 }
 0x481   :  { %v1283_v10 = vrot.slane %v1282_v8, 2  ;;  %v1288_v11 = vadd.f32 %v1287_v9, %v1280_v7 }
 0x483   :  { %v1284_v12 = vadd.f32 %v1283_v10, %v1282_v8  ;;  %v1289_v13 = vrot.slane %v1288_v11, 2 }
 0x485   :  { %v1285_v14 = vrot.slane %v1284_v12, 1  ;;  %v1290_v15 = vadd.f32 %v1289_v13, %v1288_v11 }
 0x487   :  { %v1286_v17 = vadd.f32 %v1285_v14, %v1284_v12  ;;  %v1291_v16 = vrot.slane %v1290_v15, 1 }
 0x489   :  { %v1293_v18 = vmul.f32 0.125, %v1286_v17  ;;  %v1292_v19 = vadd.f32 %v1291_v16, %v1290_v15 }
 0x48b   :  { %v1295_v20 = vadd.f32 1e-05, %v1293_v18  ;;  %v1294_v21 = vmul.f32 0.125, %v1292_v19 }
 0x48d   :  { %1707 = vrsqrt.f32 %v1295_v20  ;;  %v1296_v22 = vadd.f32 1e-05, %v1294_v21 }
 0x48f   :  { %1709 = vrsqrt.f32 %v1296_v22 }
 0x497   :  { %v1708_v23 = vpop.eup %1707 }
 0x498   :  { %v1299_v24 = vmul.f32 %v1708_v23, %v1277_v2 }
 0x499   :  { %v1710_v25 = vpop.eup %1709 }
 0x49a   :  { %1301 = vst [vmem:[#allocation11] sm:$0xff] %v1299_v24  ;;  %v1300_v26 = vmul.f32 %v1710_v25, %v1278_v5 }
 0x49c   :  { %1302 = vst [vmem:[#allocation11 + $0x8] sm:$0xff] %v1300_v26 }
 0x49d   :  { %1832 = shalt.err (!%p1829_p2)
}
 0x49e   :  { %s1833_s14 = scalar_lea.hbm %s2050_s9, 256 }
 0x49f   :  { %p1834_p3 = scmp.ne.s32.totalorder %s2050_s9, %s1833_s14  ;;  %p1837_p4 = scmp.lt.u32.totalorder %s1833_s14, %s2050_s9 }
 0x4a1   :  { %p1839_p5 = pnand %p1837_p4, %p1834_p3 }
 0x4a3   :  { %1842 = shalt.err (!%p1839_p5)
}
 0x4a4   :  { %s1863_s26 = smov 128   ;;  %s1864_s18 = smov 8  }
 0x4a5   :  { %1314 = dma.vmem_to_hbm [thread:$0]  %s1309_s7, 256, %s2050_s9, [#allocation4], %s1863_s26, %s1863_s26, %s1864_s18  }
 0x4a6   :  { %1849 = dma.done.wait [#allocation4], 256  }
 0x4a7   :  { %1850 = vsyncadd [#allocation4], 4294967040 }
 0x4a8   :  { %1318 = vsyncpa [#allocation3], 1 }
 0x4a9   :  { %1319 = vsyncpa [#allocation6], 1 }
 0x4aa   :  { %1320 = vsyncpa [#allocation9], 1 }
 0x4ab   :  { %1321 = vsyncpa [#allocation4], 1 }

</bundles_post_ra>
